<compile_context>
chip_gen: v5e
topology: v5e:2x2
jax: 0.10.0
libtpu: 0.0.40
codegen_flags: <defaults>
</compile_context>

<pallas_src>
import jax
import jax.numpy as jnp
from jax.experimental import pallas as pl
from jax.experimental.pallas import tpu as pltpu


def rnn_last_plus_linear_kernel(emb_ref, wih_ref, whh_ref, b_ref,
                                wlin_ref, blin_ref, out_ref):
    """Single kernel invocation (no grid).

    emb_ref  : (T, B, E)  time-major embeddings
    wih_ref  : (E, H)     W_ih^T
    whh_ref  : (H, H)     W_hh^T
    b_ref    : (1, H)     b_ih + b_hh
    wlin_ref : (H, Cp)    first H rows of lin.weight^T, zero-padded to Cp lanes
    blin_ref : (1, Cp)    lin bias, zero-padded to Cp lanes
    out_ref  : (B, Cp)
    """
    T, B, E = emb_ref.shape
    H = whh_ref.shape[0]

    # ---- Phase 1: hoisted input projection for all timesteps (one big matmul) ----
    x_all = emb_ref[...].reshape(T * B, E)                        # (T*B, E)
    gates_x = (jnp.dot(x_all, wih_ref[...],
                       preferred_element_type=jnp.float32)
               + b_ref[...]).reshape(T, B, H)                     # (T, B, H)

    # ---- Phase 2: serial recurrence, fully unrolled; h stays in vregs ----
    w_hh = whh_ref[...]                                           # loop-invariant, loaded once
    h = jnp.zeros((B, H), jnp.float32)
    for t in range(T):                                            # T small & static -> unrolled
        h = jnp.tanh(gates_x[t]
                     + jnp.dot(h, w_hh, preferred_element_type=jnp.float32))

    # ---- Phase 3: classifier on last hidden state (lane-dense padded output) ----
    out_ref[...] = (jnp.dot(h, wlin_ref[...], preferred_element_type=jnp.float32)
                    + blin_ref[...]).astype(out_ref.dtype)


def rnn_model_forward(emb, w_ih, w_hh, b_gates, w_lin_h, b_lin):
    """emb: (B, T, E) float32. Returns (B, C) logits."""
    B, T, E = emb.shape
    H = w_hh.shape[0]
    C = w_lin_h.shape[1]
    C_pad = max(128, ((C + 127) // 128) * 128)    # lane-dense output, avoids masked vst

    w_lin_pad = jnp.zeros((H, C_pad), jnp.float32).at[:, :C].set(w_lin_h)
    b_lin_pad = jnp.zeros((1, C_pad), jnp.float32).at[:, :C].set(b_lin)
    emb_t = jnp.swapaxes(emb, 0, 1)               # (T, B, E) time-major

    vmem_specs = [pl.BlockSpec(memory_space=pltpu.MemorySpace.VMEM) for _ in range(6)]
    out_pad = pl.pallas_call(
        rnn_last_plus_linear_kernel,
        out_shape=jax.ShapeDtypeStruct((B, C_pad), jnp.float32),
        in_specs=vmem_specs,
        out_specs=pl.BlockSpec(memory_space=pltpu.MemorySpace.VMEM),
    )(emb_t, w_ih, w_hh, b_gates, w_lin_pad, b_lin_pad)
    return out_pad[:, :C]


rnn_model_forward_jit = jax.jit(rnn_model_forward)


def reference_forward(emb, w_ih, w_hh, b_gates, w_lin_h, b_lin):
    """Pure-JAX reference (lax.scan) mirroring PyTorch nn.RNN (tanh) semantics."""
    B, T, E = emb.shape
    H = w_hh.shape[0]

    def step(h, x_t):
        h = jnp.tanh(x_t @ w_ih + h @ w_hh + b_gates[0])
        return h, None

    h0 = jnp.zeros((B, H), jnp.float32)
    h_last, _ = jax.lax.scan(step, h0, jnp.swapaxes(emb, 0, 1))
    return h_last @ w_lin_h + b_lin[0]


if __name__ == "__main__":
    # Small, module-consistent shapes.
    vocab_size = 50
    num_classes = 4
    emb_size = 128
    hidden_size = 128
    batch = 8
    seq = 8

    key = jax.random.PRNGKey(0)
    k_emb, k_wih, k_whh, k_bih, k_bhh, k_wl, k_bl, k_tok = jax.random.split(key, 8)

    bound = 1.0 / jnp.sqrt(hidden_size)

    # nn.Embedding(vocab_size, emb_size): weights ~ N(0, 1)
    emb_table = jax.random.normal(k_emb, (vocab_size, emb_size), jnp.float32)

    # nn.RNN(emb_size, hidden_size, batch_first=True): U(-1/sqrt(H), 1/sqrt(H)); stored
    # transposed for x @ W. Vanilla RNN: h_t = tanh(x_t W_ih^T + b_ih + h_{t-1} W_hh^T + b_hh).
    w_ih = jax.random.uniform(k_wih, (emb_size, hidden_size), jnp.float32, -bound, bound)
    w_hh = jax.random.uniform(k_whh, (hidden_size, hidden_size), jnp.float32, -bound, bound)
    b_ih = jax.random.uniform(k_bih, (hidden_size,), jnp.float32, -bound, bound)
    b_hh = jax.random.uniform(k_bhh, (hidden_size,), jnp.float32, -bound, bound)
    b_gates = (b_ih + b_hh).reshape(1, hidden_size)

    # nn.Linear(2*hidden_size, num_classes) per __init__; only the first H input rows are usable.
    w_lin_full = jax.random.uniform(k_wl, (2 * hidden_size, num_classes), jnp.float32, -bound, bound)
    b_lin = jax.random.uniform(k_bl, (num_classes,), jnp.float32, -bound, bound).reshape(1, num_classes)
    w_lin_h = w_lin_full[:hidden_size, :]

    # Integer token ids (B, T) — embedding lookup is a gather; done as glue in plain JAX.
    tokens = jax.random.randint(k_tok, (batch, seq), 0, vocab_size, jnp.int32)
    emb = jnp.take(emb_table, tokens, axis=0)              # (B, T, E)

    out = rnn_model_forward_jit(emb, w_ih, w_hh, b_gates, w_lin_h, b_lin)
    out = jax.block_until_ready(out)

    ref = reference_forward(emb, w_ih, w_hh, b_gates, w_lin_h, b_lin)
    assert out.shape == (batch, num_classes)
    assert jnp.allclose(out, ref, atol=1e-4, rtol=1e-4), (out, ref)

    print("KERNEL_OK")
</pallas_src>

<mosaic_0001>
module attributes {stable_mosaic.version = 11 : i64} {
  func.func @rnn_last_plus_linear_kernel(%arg0: memref<8x8x128xf32, #tpu.memory_space<vmem>>, %arg1: memref<128x128xf32, #tpu.memory_space<vmem>>, %arg2: memref<128x128xf32, #tpu.memory_space<vmem>>, %arg3: memref<1x128xf32, #tpu.memory_space<vmem>>, %arg4: memref<128x128xf32, #tpu.memory_space<vmem>>, %arg5: memref<1x128xf32, #tpu.memory_space<vmem>>, %arg6: memref<8x128xf32, #tpu.memory_space<vmem>>) attributes {dimension_semantics = [], scalar_prefetch = 0 : i64, scratch_operands = 0 : i64, tpu.core_type = #tpu.core_type<tc>} {
    %c0 = arith.constant 0 : index
    %c0_0 = arith.constant 0 : index
    %c0_1 = arith.constant 0 : index
    %0 = vector.load %arg0[%c0, %c0_0, %c0_1] : memref<8x8x128xf32, #tpu.memory_space<vmem>>, vector<8x8x128xf32>
    %1 = vector.shape_cast %0 : vector<8x8x128xf32> to vector<64x128xf32>
    %c0_2 = arith.constant 0 : index
    %c0_3 = arith.constant 0 : index
    %2 = vector.load %arg1[%c0_2, %c0_3] : memref<128x128xf32, #tpu.memory_space<vmem>>, vector<128x128xf32>
    %cst = arith.constant dense<0.000000e+00> : vector<64x128xf32>
    %3 = tpu.matmul %1, %2, %cst {dimension_numbers = #tpu.dot_dimension_numbers<[1], [0], [0], [1], [0, 0, 1, 1], [], []>} : vector<64x128xf32>, vector<128x128xf32>, vector<64x128xf32> -> vector<64x128xf32>
    %c0_4 = arith.constant 0 : index
    %c0_5 = arith.constant 0 : index
    %4 = vector.load %arg3[%c0_4, %c0_5] : memref<1x128xf32, #tpu.memory_space<vmem>>, vector<1x128xf32>
    %5 = vector.broadcast %4 : vector<1x128xf32> to vector<64x128xf32>
    %6 = arith.addf %3, %5 : vector<64x128xf32>
    %7 = vector.shape_cast %6 : vector<64x128xf32> to vector<8x8x128xf32>
    %c0_6 = arith.constant 0 : index
    %c0_7 = arith.constant 0 : index
    %8 = vector.load %arg2[%c0_6, %c0_7] : memref<128x128xf32, #tpu.memory_space<vmem>>, vector<128x128xf32>
    %cst_8 = arith.constant 0.000000e+00 : f32
    %9 = vector.broadcast %cst_8 : f32 to vector<8x128xf32>
    %10 = vector.extract_strided_slice %7 {offsets = [0, 0, 0], sizes = [1, 8, 128], strides = [1, 1, 1]} : vector<8x8x128xf32> to vector<1x8x128xf32>
    %11 = vector.shape_cast %10 : vector<1x8x128xf32> to vector<8x128xf32>
    %cst_9 = arith.constant dense<0.000000e+00> : vector<8x128xf32>
    %12 = tpu.matmul %9, %8, %cst_9 {dimension_numbers = #tpu.dot_dimension_numbers<[1], [0], [0], [1], [0, 0, 1, 1], [], []>} : vector<8x128xf32>, vector<128x128xf32>, vector<8x128xf32> -> vector<8x128xf32>
    %13 = arith.addf %11, %12 : vector<8x128xf32>
    %14 = math.tanh %13 : vector<8x128xf32>
    %15 = vector.extract_strided_slice %7 {offsets = [1, 0, 0], sizes = [1, 8, 128], strides = [1, 1, 1]} : vector<8x8x128xf32> to vector<1x8x128xf32>
    %16 = vector.shape_cast %15 : vector<1x8x128xf32> to vector<8x128xf32>
    %cst_10 = arith.constant dense<0.000000e+00> : vector<8x128xf32>
    %17 = tpu.matmul %14, %8, %cst_10 {dimension_numbers = #tpu.dot_dimension_numbers<[1], [0], [0], [1], [0, 0, 1, 1], [], []>} : vector<8x128xf32>, vector<128x128xf32>, vector<8x128xf32> -> vector<8x128xf32>
    %18 = arith.addf %16, %17 : vector<8x128xf32>
    %19 = math.tanh %18 : vector<8x128xf32>
    %20 = vector.extract_strided_slice %7 {offsets = [2, 0, 0], sizes = [1, 8, 128], strides = [1, 1, 1]} : vector<8x8x128xf32> to vector<1x8x128xf32>
    %21 = vector.shape_cast %20 : vector<1x8x128xf32> to vector<8x128xf32>
    %cst_11 = arith.constant dense<0.000000e+00> : vector<8x128xf32>
    %22 = tpu.matmul %19, %8, %cst_11 {dimension_numbers = #tpu.dot_dimension_numbers<[1], [0], [0], [1], [0, 0, 1, 1], [], []>} : vector<8x128xf32>, vector<128x128xf32>, vector<8x128xf32> -> vector<8x128xf32>
    %23 = arith.addf %21, %22 : vector<8x128xf32>
    %24 = math.tanh %23 : vector<8x128xf32>
    %25 = vector.extract_strided_slice %7 {offsets = [3, 0, 0], sizes = [1, 8, 128], strides = [1, 1, 1]} : vector<8x8x128xf32> to vector<1x8x128xf32>
    %26 = vector.shape_cast %25 : vector<1x8x128xf32> to vector<8x128xf32>
    %cst_12 = arith.constant dense<0.000000e+00> : vector<8x128xf32>
    %27 = tpu.matmul %24, %8, %cst_12 {dimension_numbers = #tpu.dot_dimension_numbers<[1], [0], [0], [1], [0, 0, 1, 1], [], []>} : vector<8x128xf32>, vector<128x128xf32>, vector<8x128xf32> -> vector<8x128xf32>
    %28 = arith.addf %26, %27 : vector<8x128xf32>
    %29 = math.tanh %28 : vector<8x128xf32>
    %30 = vector.extract_strided_slice %7 {offsets = [4, 0, 0], sizes = [1, 8, 128], strides = [1, 1, 1]} : vector<8x8x128xf32> to vector<1x8x128xf32>
    %31 = vector.shape_cast %30 : vector<1x8x128xf32> to vector<8x128xf32>
    %cst_13 = arith.constant dense<0.000000e+00> : vector<8x128xf32>
    %32 = tpu.matmul %29, %8, %cst_13 {dimension_numbers = #tpu.dot_dimension_numbers<[1], [0], [0], [1], [0, 0, 1, 1], [], []>} : vector<8x128xf32>, vector<128x128xf32>, vector<8x128xf32> -> vector<8x128xf32>
    %33 = arith.addf %31, %32 : vector<8x128xf32>
    %34 = math.tanh %33 : vector<8x128xf32>
    %35 = vector.extract_strided_slice %7 {offsets = [5, 0, 0], sizes = [1, 8, 128], strides = [1, 1, 1]} : vector<8x8x128xf32> to vector<1x8x128xf32>
    %36 = vector.shape_cast %35 : vector<1x8x128xf32> to vector<8x128xf32>
    %cst_14 = arith.constant dense<0.000000e+00> : vector<8x128xf32>
    %37 = tpu.matmul %34, %8, %cst_14 {dimension_numbers = #tpu.dot_dimension_numbers<[1], [0], [0], [1], [0, 0, 1, 1], [], []>} : vector<8x128xf32>, vector<128x128xf32>, vector<8x128xf32> -> vector<8x128xf32>
    %38 = arith.addf %36, %37 : vector<8x128xf32>
    %39 = math.tanh %38 : vector<8x128xf32>
    %40 = vector.extract_strided_slice %7 {offsets = [6, 0, 0], sizes = [1, 8, 128], strides = [1, 1, 1]} : vector<8x8x128xf32> to vector<1x8x128xf32>
    %41 = vector.shape_cast %40 : vector<1x8x128xf32> to vector<8x128xf32>
    %cst_15 = arith.constant dense<0.000000e+00> : vector<8x128xf32>
    %42 = tpu.matmul %39, %8, %cst_15 {dimension_numbers = #tpu.dot_dimension_numbers<[1], [0], [0], [1], [0, 0, 1, 1], [], []>} : vector<8x128xf32>, vector<128x128xf32>, vector<8x128xf32> -> vector<8x128xf32>
    %43 = arith.addf %41, %42 : vector<8x128xf32>
    %44 = math.tanh %43 : vector<8x128xf32>
    %45 = vector.extract_strided_slice %7 {offsets = [7, 0, 0], sizes = [1, 8, 128], strides = [1, 1, 1]} : vector<8x8x128xf32> to vector<1x8x128xf32>
    %46 = vector.shape_cast %45 : vector<1x8x128xf32> to vector<8x128xf32>
    %cst_16 = arith.constant dense<0.000000e+00> : vector<8x128xf32>
    %47 = tpu.matmul %44, %8, %cst_16 {dimension_numbers = #tpu.dot_dimension_numbers<[1], [0], [0], [1], [0, 0, 1, 1], [], []>} : vector<8x128xf32>, vector<128x128xf32>, vector<8x128xf32> -> vector<8x128xf32>
    %48 = arith.addf %46, %47 : vector<8x128xf32>
    %49 = math.tanh %48 : vector<8x128xf32>
    %c0_17 = arith.constant 0 : index
    %c0_18 = arith.constant 0 : index
    %50 = vector.load %arg4[%c0_17, %c0_18] : memref<128x128xf32, #tpu.memory_space<vmem>>, vector<128x128xf32>
    %cst_19 = arith.constant dense<0.000000e+00> : vector<8x128xf32>
    %51 = tpu.matmul %49, %50, %cst_19 {dimension_numbers = #tpu.dot_dimension_numbers<[1], [0], [0], [1], [0, 0, 1, 1], [], []>} : vector<8x128xf32>, vector<128x128xf32>, vector<8x128xf32> -> vector<8x128xf32>
    %c0_20 = arith.constant 0 : index
    %c0_21 = arith.constant 0 : index
    %52 = vector.load %arg5[%c0_20, %c0_21] : memref<1x128xf32, #tpu.memory_space<vmem>>, vector<1x128xf32>
    %53 = vector.broadcast %52 : vector<1x128xf32> to vector<8x128xf32>
    %54 = arith.addf %51, %53 : vector<8x128xf32>
    %c0_22 = arith.constant 0 : index
    %c0_23 = arith.constant 0 : index
    %55 = vector.load %arg6[%c0_22, %c0_23] : memref<8x128xf32, #tpu.memory_space<vmem>>, vector<8x128xf32>
    tpu.vector_store %arg6[%c0_22, %c0_23], %54 {strides = array<i32>} : memref<8x128xf32, #tpu.memory_space<vmem>>, vector<8x128xf32>,
    return
  }
}

</mosaic_0001>

<bundles_post_ra>
// kernel: rnn_model_forward.1
= control target key start
LH: loop header
LB: loop body
LE: loop exit
PB: predicated region body
PF: predicated region fallthrough
CT: control target
= control target key end

     0   :  { %v348_v33 = vmov 0.0   ;;  %s731_s1 = inlined_call_operand.vmem [shape: f32[128,128], index: 1, kind: input, shape index: {}]   ;;  %s732_s2 = inlined_call_operand.vmem [shape: f32[128,128], index: 2, kind: input, shape index: {}]   ;;  %s733_s3 = inlined_call_operand.vmem [shape: f32[1,128], index: 3, kind: input, shape index: {}]   ;;  %s734_s0 = inlined_call_operand.vmem [shape: f32[8,8,128], index: 0, kind: input, shape index: {}]   ;;  %s735_s4 = inlined_call_operand.vmem [shape: f32[128,128], index: 4, kind: input, shape index: {}]   ;;  %s736_s5 = inlined_call_operand.vmem [shape: f32[1,128], index: 5, kind: input, shape index: {}]   ;;  %s737_s6 = inlined_call_operand.vmem [shape: f32[8,128], index: 6, kind: output, shape index: {}]  }
   0x1   :  { %v46_v0 = vld [vmem:[%s731_s1 + $0x78] sm:$0xff]  ;;  %v45_v1 = vld [vmem:[%s731_s1 + $0x70] sm:$0xff]  ;;  %v44_v4 = vld [vmem:[%s731_s1 + $0x68] sm:$0xff] }
   0x2   :  { %v393_v2 = vld [vmem:[%s732_s2 + $0x78] sm:$0xff]  ;;  %51 = vmatpush.msra.mxu0 %v46_v0  ;;  %v399_v3 = vld [vmem:[%s732_s2 + $0x70] sm:$0xff]  ;;  %v407_v5 = vld [vmem:[%s732_s2 + $0x68] sm:$0xff] }
   0x3   :  { %108 = vmatpush.msra.mxu1 %v393_v2  ;;  %130 = vmatpush.msra.mxu2 %v393_v2  ;;  %v43_v6 = vld [vmem:[%s731_s1 + $0x60] sm:$0xff]  ;;  %v42_v8 = vld [vmem:[%s731_s1 + $0x58] sm:$0xff]  ;;  %v41_v10 = vld [vmem:[%s731_s1 + $0x50] sm:$0xff] }
   0x4   :  { %152 = vmatpush.msra.mxu3 %v393_v2  ;;  %52 = vmatpush.msra.mxu0 %v45_v1  ;;  %v418_v7 = vld [vmem:[%s732_s2 + $0x60] sm:$0xff]  ;;  %v429_v9 = vld [vmem:[%s732_s2 + $0x58] sm:$0xff]  ;;  %v440_v11 = vld [vmem:[%s732_s2 + $0x50] sm:$0xff] }
   0x5   :  { %109 = vmatpush.msra.mxu1 %v399_v3  ;;  %131 = vmatpush.msra.mxu2 %v399_v3  ;;  %v40_v12 = vld [vmem:[%s731_s1 + $0x48] sm:$0xff]  ;;  %v39_v14 = vld [vmem:[%s731_s1 + $0x40] sm:$0xff]  ;;  %v38_v16 = vld [vmem:[%s731_s1 + $0x38] sm:$0xff] }
   0x6   :  { %153 = vmatpush.msra.mxu3 %v399_v3  ;;  %53 = vmatpush.msra.mxu0 %v44_v4  ;;  %v451_v13 = vld [vmem:[%s732_s2 + $0x48] sm:$0xff]  ;;  %v462_v15 = vld [vmem:[%s732_s2 + $0x40] sm:$0xff]  ;;  %v473_v17 = vld [vmem:[%s732_s2 + $0x38] sm:$0xff] }
   0x7   :  { %110 = vmatpush.msra.mxu1 %v407_v5  ;;  %132 = vmatpush.msra.mxu2 %v407_v5  ;;  %v37_v18 = vld [vmem:[%s731_s1 + $0x30] sm:$0xff]  ;;  %v36_v20 = vld [vmem:[%s731_s1 + $0x28] sm:$0xff]  ;;  %v35_v22 = vld [vmem:[%s731_s1 + $0x20] sm:$0xff] }
   0x8   :  { %154 = vmatpush.msra.mxu3 %v407_v5  ;;  %54 = vmatpush.msra.mxu0 %v43_v6  ;;  %v484_v19 = vld [vmem:[%s732_s2 + $0x30] sm:$0xff]  ;;  %v495_v21 = vld [vmem:[%s732_s2 + $0x28] sm:$0xff]  ;;  %v506_v23 = vld [vmem:[%s732_s2 + $0x20] sm:$0xff] }
   0x9   :  { %111 = vmatpush.msra.mxu1 %v418_v7  ;;  %133 = vmatpush.msra.mxu2 %v418_v7  ;;  %v34_v24 = vld [vmem:[%s731_s1 + $0x18] sm:$0xff]  ;;  %v33_v26 = vld [vmem:[%s731_s1 + $0x10] sm:$0xff]  ;;  %v32_v28 = vld [vmem:[%s731_s1 + $0x8] sm:$0xff] }
   0xa   :  { %155 = vmatpush.msra.mxu3 %v418_v7  ;;  %55 = vmatpush.msra.mxu0 %v42_v8  ;;  %v517_v25 = vld [vmem:[%s732_s2 + $0x18] sm:$0xff]  ;;  %v528_v27 = vld [vmem:[%s732_s2 + $0x10] sm:$0xff]  ;;  %v539_v29 = vld [vmem:[%s732_s2 + $0x8] sm:$0xff] }
   0xb   :  { %112 = vmatpush.msra.mxu1 %v429_v9  ;;  %134 = vmatpush.msra.mxu2 %v429_v9  ;;  %v31_v30 = vld [vmem:[%s731_s1] sm:$0xff]  ;;  %v24_v34 = vld [vmem:[%s734_s0 + $0x8] sm:$0xff]  ;;  %v25_v41 = vld [vmem:[%s734_s0 + $0x10] sm:$0xff] }
   0xc   :  { %156 = vmatpush.msra.mxu3 %v429_v9  ;;  %56 = vmatpush.msra.mxu0 %v41_v10  ;;  %v550_v31 = vld [vmem:[%s732_s2] sm:$0xff]  ;;  %v26_v47 = vld [vmem:[%s734_s0 + $0x18] sm:$0xff]  ;;  %v28_v59 = vld [vmem:[%s734_s0 + $0x28] sm:$0xff] }
   0xd   :  { %113 = vmatpush.msra.mxu1 %v440_v11  ;;  %135 = vmatpush.msra.mxu2 %v440_v11  ;;  %v23_v32 = vld [vmem:[%s734_s0] sm:$0xff]  ;;  %v29_v60 = vld [vmem:[%s734_s0 + $0x30] sm:$0xff]  ;;  %v299_v8 = vld [vmem:[%s735_s4 + $0x78] sm:$0xff] }
   0xe   :  { %157 = vmatpush.msra.mxu3 %v440_v11  ;;  %57 = vmatpush.msra.mxu0 %v40_v12  ;;  %v649_v35 = vld [vmem:[%s733_s3] ss:$0 sm:$0xff] }
   0xf   :  { %114 = vmatpush.msra.mxu1 %v451_v13  ;;  %136 = vmatpush.msra.mxu2 %v451_v13  ;;  %v27_v53 = vld [vmem:[%s734_s0 + $0x20] sm:$0xff] }
  0x10   :  { %158 = vmatpush.msra.mxu3 %v451_v13  ;;  %58 = vmatpush.msra.mxu0 %v39_v14  ;;  %v296_v12 = vld [vmem:[%s735_s4 + $0x60] sm:$0xff]  ;;  %v294_v14 = vld [vmem:[%s735_s4 + $0x50] sm:$0xff] }
  0x11   :  { %115 = vmatpush.msra.mxu1 %v462_v15  ;;  %137 = vmatpush.msra.mxu2 %v462_v15 }
  0x12   :  { %159 = vmatpush.msra.mxu3 %v462_v15  ;;  %59 = vmatpush.msra.mxu0 %v38_v16 }
  0x13   :  { %116 = vmatpush.msra.mxu1 %v473_v17  ;;  %138 = vmatpush.msra.mxu2 %v473_v17 }
  0x14   :  { %160 = vmatpush.msra.mxu3 %v473_v17  ;;  %60 = vmatpush.msra.mxu0 %v37_v18  ;;  %v291_v18 = vld [vmem:[%s735_s4 + $0x38] sm:$0xff] }
  0x15   :  { %117 = vmatpush.msra.mxu1 %v484_v19  ;;  %139 = vmatpush.msra.mxu2 %v484_v19 }
  0x16   :  { %161 = vmatpush.msra.mxu3 %v484_v19  ;;  %61 = vmatpush.msra.mxu0 %v36_v20  ;;  %v289_v20 = vld [vmem:[%s735_s4 + $0x28] sm:$0xff] }
  0x17   :  { %118 = vmatpush.msra.mxu1 %v495_v21  ;;  %140 = vmatpush.msra.mxu2 %v495_v21 }
  0x18   :  { %162 = vmatpush.msra.mxu3 %v495_v21  ;;  %62 = vmatpush.msra.mxu0 %v35_v22 }
  0x19   :  { %119 = vmatpush.msra.mxu1 %v506_v23  ;;  %141 = vmatpush.msra.mxu2 %v506_v23 }
  0x1a   :  { %163 = vmatpush.msra.mxu3 %v506_v23  ;;  %63 = vmatpush.msra.mxu0 %v34_v24 }
  0x1b   :  { %120 = vmatpush.msra.mxu1 %v517_v25  ;;  %142 = vmatpush.msra.mxu2 %v517_v25 }
  0x1c   :  { %164 = vmatpush.msra.mxu3 %v517_v25  ;;  %64 = vmatpush.msra.mxu0 %v33_v26  ;;  %v287_v26 = vld [vmem:[%s735_s4 + $0x18] sm:$0xff] }
  0x1d   :  { %121 = vmatpush.msra.mxu1 %v528_v27  ;;  %143 = vmatpush.msra.mxu2 %v528_v27 }
  0x1e   :  { %165 = vmatpush.msra.mxu3 %v528_v27  ;;  %65 = vmatpush.msra.mxu0 %v32_v28  ;;  %v285_v28 = vld [vmem:[%s735_s4 + $0x8] sm:$0xff] }
  0x1f   :  { %122 = vmatpush.msra.mxu1 %v539_v29  ;;  %144 = vmatpush.msra.mxu2 %v539_v29 }
  0x20   :  { %166 = vmatpush.msra.mxu3 %v539_v29  ;;  %66 = vmatpush.msra.mxu0 %v31_v30 }
  0x21   :  { %123 = vmatpush.msra.mxu1 %v550_v31  ;;  %67 = vmatmul.f32.vlgmr.msra.gmra.mxu0 %v23_v32 }
  0x22   :  { %124 = vmatmul.f32.vlgmr.msra.gmra.mxu1 %v348_v33  ;;  %145 = vmatpush.msra.mxu2 %v550_v31 }
  0x23   :  { %167 = vmatpush.msra.mxu3 %v550_v31  ;;  %174 = vmatpush.msrb.mxu1 %v393_v2 }
  0x24   :  { %196 = vmatpush.msrb.mxu2 %v393_v2  ;;  %240 = vmatpush.msrb.mxu0 %v393_v2 }
  0x25   :  { %218 = vmatpush.msrb.mxu3 %v393_v2  ;;  %175 = vmatpush.msrb.mxu1 %v399_v3 }
  0x26   :  { %197 = vmatpush.msrb.mxu2 %v399_v3  ;;  %241 = vmatpush.msrb.mxu0 %v399_v3 }
  0x27   :  { %219 = vmatpush.msrb.mxu3 %v399_v3  ;;  %176 = vmatpush.msrb.mxu1 %v407_v5 }
  0x28   :  { %198 = vmatpush.msrb.mxu2 %v407_v5  ;;  %242 = vmatpush.msrb.mxu0 %v407_v5 }
  0x29   :  { %220 = vmatpush.msrb.mxu3 %v407_v5  ;;  %177 = vmatpush.msrb.mxu1 %v418_v7 }
  0x2a   :  { %199 = vmatpush.msrb.mxu2 %v418_v7  ;;  %243 = vmatpush.msrb.mxu0 %v418_v7 }
  0x2b   :  { %221 = vmatpush.msrb.mxu3 %v418_v7  ;;  %178 = vmatpush.msrb.mxu1 %v429_v9 }
  0x2c   :  { %200 = vmatpush.msrb.mxu2 %v429_v9  ;;  %244 = vmatpush.msrb.mxu0 %v429_v9 }
  0x2d   :  { %222 = vmatpush.msrb.mxu3 %v429_v9  ;;  %179 = vmatpush.msrb.mxu1 %v440_v11 }
  0x2e   :  { %201 = vmatpush.msrb.mxu2 %v440_v11  ;;  %245 = vmatpush.msrb.mxu0 %v440_v11 }
  0x2f   :  { %223 = vmatpush.msrb.mxu3 %v440_v11  ;;  %180 = vmatpush.msrb.mxu1 %v451_v13 }
  0x30   :  { %202 = vmatpush.msrb.mxu2 %v451_v13  ;;  %246 = vmatpush.msrb.mxu0 %v451_v13 }
  0x31   :  { %224 = vmatpush.msrb.mxu3 %v451_v13  ;;  %181 = vmatpush.msrb.mxu1 %v462_v15 }
  0x32   :  { %203 = vmatpush.msrb.mxu2 %v462_v15  ;;  %247 = vmatpush.msrb.mxu0 %v462_v15 }
  0x33   :  { %225 = vmatpush.msrb.mxu3 %v462_v15  ;;  %182 = vmatpush.msrb.mxu1 %v473_v17 }
  0x34   :  { %204 = vmatpush.msrb.mxu2 %v473_v17  ;;  %248 = vmatpush.msrb.mxu0 %v473_v17 }
  0x35   :  { %226 = vmatpush.msrb.mxu3 %v473_v17  ;;  %183 = vmatpush.msrb.mxu1 %v484_v19 }
  0x36   :  { %205 = vmatpush.msrb.mxu2 %v484_v19  ;;  %249 = vmatpush.msrb.mxu0 %v484_v19 }
  0x37   :  { %227 = vmatpush.msrb.mxu3 %v484_v19  ;;  %184 = vmatpush.msrb.mxu1 %v495_v21 }
  0x38   :  { %206 = vmatpush.msrb.mxu2 %v495_v21  ;;  %250 = vmatpush.msrb.mxu0 %v495_v21 }
  0x39   :  { %228 = vmatpush.msrb.mxu3 %v495_v21  ;;  %185 = vmatpush.msrb.mxu1 %v506_v23 }
  0x3a   :  { %207 = vmatpush.msrb.mxu2 %v506_v23  ;;  %251 = vmatpush.msrb.mxu0 %v506_v23 }
  0x3b   :  { %229 = vmatpush.msrb.mxu3 %v506_v23  ;;  %186 = vmatpush.msrb.mxu1 %v517_v25 }
  0x3c   :  { %208 = vmatpush.msrb.mxu2 %v517_v25  ;;  %252 = vmatpush.msrb.mxu0 %v517_v25 }
  0x3d   :  { %230 = vmatpush.msrb.mxu3 %v517_v25  ;;  %187 = vmatpush.msrb.mxu1 %v528_v27 }
  0x3e   :  { %209 = vmatpush.msrb.mxu2 %v528_v27  ;;  %253 = vmatpush.msrb.mxu0 %v528_v27 }
  0x3f   :  { %231 = vmatpush.msrb.mxu3 %v528_v27  ;;  %188 = vmatpush.msrb.mxu1 %v539_v29 }
  0x40   :  { %210 = vmatpush.msrb.mxu2 %v539_v29  ;;  %254 = vmatpush.msrb.mxu0 %v539_v29 }
  0x41   :  { %232 = vmatpush.msrb.mxu3 %v539_v29  ;;  %189 = vmatpush.msrb.mxu1 %v550_v31 }
  0x42   :  { %211 = vmatpush.msrb.mxu2 %v550_v31  ;;  %255 = vmatpush.msrb.mxu0 %v550_v31 }
  0x43   :  { %233 = vmatpush.msrb.mxu3 %v550_v31  ;;  %262 = vmatpush.msra.mxu1 %v393_v2  ;;  %v30_v2 = vld [vmem:[%s734_s0 + $0x38] sm:$0xff] }
  0x44   :  { %70 = vmatmul.f32.gmra.mxu0 %v24_v34  ;;  %v331_v34 = vld [vmem:[%s736_s5] ss:$0 sm:$0xff] }
  0x45   :  { %263 = vmatpush.msra.mxu1 %v399_v3 }
  0x47   :  { %264 = vmatpush.msra.mxu1 %v407_v5 }
  0x49   :  { %265 = vmatpush.msra.mxu1 %v418_v7 }
  0x4b   :  { %266 = vmatpush.msra.mxu1 %v429_v9  ;;  %v298_v9 = vld [vmem:[%s735_s4 + $0x70] sm:$0xff] }
  0x4c   :  { %73 = vmatmul.f32.gmra.mxu0 %v25_v41 }
  0x4d   :  { %267 = vmatpush.msra.mxu1 %v440_v11  ;;  %v297_v11 = vld [vmem:[%s735_s4 + $0x68] sm:$0xff] }
  0x4f   :  { %268 = vmatpush.msra.mxu1 %v451_v13  ;;  %v295_v13 = vld [vmem:[%s735_s4 + $0x58] sm:$0xff] }
  0x51   :  { %269 = vmatpush.msra.mxu1 %v462_v15  ;;  %v293_v15 = vld [vmem:[%s735_s4 + $0x48] sm:$0xff] }
  0x53   :  { %270 = vmatpush.msra.mxu1 %v473_v17  ;;  %v292_v17 = vld [vmem:[%s735_s4 + $0x40] sm:$0xff] }
  0x54   :  { %76 = vmatmul.f32.gmra.mxu0 %v26_v47 }
  0x55   :  { %271 = vmatpush.msra.mxu1 %v484_v19  ;;  %v290_v19 = vld [vmem:[%s735_s4 + $0x30] sm:$0xff] }
  0x57   :  { %272 = vmatpush.msra.mxu1 %v495_v21 }
  0x59   :  { %273 = vmatpush.msra.mxu1 %v506_v23 }
  0x5b   :  { %274 = vmatpush.msra.mxu1 %v517_v25  ;;  %v288_v25 = vld [vmem:[%s735_s4 + $0x20] sm:$0xff] }
  0x5c   :  { %79 = vmatmul.f32.gmra.mxu0 %v27_v53 }
  0x5d   :  { %275 = vmatpush.msra.mxu1 %v528_v27  ;;  %v286_v27 = vld [vmem:[%s735_s4 + $0x10] sm:$0xff] }
  0x5f   :  { %276 = vmatpush.msra.mxu1 %v539_v29  ;;  %v284_v29 = vld [vmem:[%s735_s4] sm:$0xff] }
  0x61   :  { %277 = vmatpush.msra.mxu1 %v550_v31 }
  0x64   :  { %82 = vmatmul.f32.gmra.mxu0 %v28_v59 }
  0x6c   :  { %85 = vmatmul.f32.gmra.mxu0 %v29_v60 }
  0x74   :  { %88 = vmatmul.f32.gmra.mxu0 %v30_v2 }
  0x9e   :  { %v68_v36 = vpop.f32.mrf.mxu0 }
  0x9f   :  { %v125_v37 = vpop.f32.mrf.mxu1  ;;  %v69_v38 = vadd.f32 %v649_v35, %v68_v36 }
  0xa1   :  { %v128_v39 = vadd.f32 %v125_v37, %v69_v38 }
  0xa3   :  { %332 = vtanh.f32 %v128_v39 }
  0xa9   :  { %v333_v40 = vpop.eup %332 }
  0xaa   :  { %146 = vmatmul.f32.vlgmr.msra.gmra.mxu2 %v333_v40 }
  0xab   :  { %304 = vmatpush.msra.mxu2 %v299_v8 }
  0xad   :  { %305 = vmatpush.msra.mxu2 %v298_v9 }
  0xaf   :  { %306 = vmatpush.msra.mxu2 %v297_v11 }
  0xb1   :  { %307 = vmatpush.msra.mxu2 %v296_v12 }
  0xb3   :  { %308 = vmatpush.msra.mxu2 %v295_v13 }
  0xb5   :  { %309 = vmatpush.msra.mxu2 %v294_v14 }
  0xb7   :  { %310 = vmatpush.msra.mxu2 %v293_v15 }
  0xb9   :  { %311 = vmatpush.msra.mxu2 %v292_v17 }
  0xbb   :  { %312 = vmatpush.msra.mxu2 %v291_v18 }
  0xbd   :  { %313 = vmatpush.msra.mxu2 %v290_v19 }
  0xbf   :  { %314 = vmatpush.msra.mxu2 %v289_v20 }
  0xc1   :  { %v71_v42 = vpop.f32.mrf.mxu0  ;;  %315 = vmatpush.msra.mxu2 %v288_v25 }
  0xc2   :  { %v72_v43 = vadd.f32 %v649_v35, %v71_v42 }
  0xc3   :  { %316 = vmatpush.msra.mxu2 %v287_v26 }
  0xc5   :  { %317 = vmatpush.msra.mxu2 %v286_v27 }
  0xc7   :  { %318 = vmatpush.msra.mxu2 %v285_v28 }
  0xc9   :  { %v74_v48 = vpop.f32.mrf.mxu0  ;;  %319 = vmatpush.msra.mxu2 %v284_v29 }
  0xca   :  { %v75_v49 = vadd.f32 %v649_v35, %v74_v48 }
  0xd1   :  { %v77_v54 = vpop.f32.mrf.mxu0 }
  0xd2   :  { %v78_v55 = vadd.f32 %v649_v35, %v77_v54 }
  0xd9   :  { %v80_v61 = vpop.f32.mrf.mxu0 }
  0xda   :  { %v81_v62 = vadd.f32 %v649_v35, %v80_v61 }
  0xe1   :  { %v83_v3 = vpop.f32.mrf.mxu0 }
  0xe2   :  { %v84_v4 = vadd.f32 %v649_v35, %v83_v3 }
  0xe9   :  { %v86_v10 = vpop.f32.mrf.mxu0 }
  0xea   :  { %v87_v21 = vadd.f32 %v649_v35, %v86_v10 }
  0xf1   :  { %v89_v16 = vpop.f32.mrf.mxu0 }
  0xf2   :  { %v90_v30 = vadd.f32 %v649_v35, %v89_v16 }
 0x12d   :  { %v147_v44 = vpop.f32.mrf.mxu2 }
 0x12e   :  { %v150_v45 = vadd.f32 %v147_v44, %v72_v43 }
 0x130   :  { %334 = vtanh.f32 %v150_v45 }
 0x136   :  { %v335_v46 = vpop.eup %334 }
 0x137   :  { %168 = vmatmul.f32.vlgmr.msra.gmra.mxu3 %v335_v46 }
 0x1ba   :  { %v169_v50 = vpop.f32.mrf.mxu3 }
 0x1bb   :  { %v172_v51 = vadd.f32 %v169_v50, %v75_v49 }
 0x1bd   :  { %336 = vtanh.f32 %v172_v51 }
 0x1c3   :  { %v337_v52 = vpop.eup %336 }
 0x1c4   :  { %190 = vmatmul.f32.vlgmr.msrb.gmra.mxu1 %v337_v52 }
 0x241   :  { %v191_v56 = vpop.f32.mrf.mxu1 }
 0x242   :  { %v194_v57 = vadd.f32 %v191_v56, %v78_v55 }
 0x244   :  { %338 = vtanh.f32 %v194_v57 }
 0x24a   :  { %v339_v58 = vpop.eup %338 }
 0x24b   :  { %212 = vmatmul.f32.vlgmr.msrb.gmra.mxu2 %v339_v58 }
 0x2ce   :  { %v213_v63 = vpop.f32.mrf.mxu2 }
 0x2cf   :  { %v216_v0 = vadd.f32 %v213_v63, %v81_v62 }
 0x2d1   :  { %340 = vtanh.f32 %v216_v0 }
 0x2d7   :  { %v341_v1 = vpop.eup %340 }
 0x2d8   :  { %234 = vmatmul.f32.vlgmr.msrb.gmra.mxu3 %v341_v1 }
 0x35b   :  { %v235_v5 = vpop.f32.mrf.mxu3 }
 0x35c   :  { %v238_v6 = vadd.f32 %v235_v5, %v84_v4 }
 0x35e   :  { %342 = vtanh.f32 %v238_v6 }
 0x364   :  { %v343_v7 = vpop.eup %342 }
 0x365   :  { %256 = vmatmul.f32.vlgmr.msrb.gmra.mxu0 %v343_v7 }
 0x3e2   :  { %v257_v22 = vpop.f32.mrf.mxu0 }
 0x3e3   :  { %v260_v23 = vadd.f32 %v257_v22, %v87_v21 }
 0x3e5   :  { %344 = vtanh.f32 %v260_v23 }
 0x3eb   :  { %v345_v24 = vpop.eup %344 }
 0x3ec   :  { %278 = vmatmul.f32.vlgmr.msra.gmra.mxu1 %v345_v24 }
 0x469   :  { %v279_v31 = vpop.f32.mrf.mxu1 }
 0x46a   :  { %v282_v32 = vadd.f32 %v279_v31, %v90_v30 }
 0x46c   :  { %346 = vtanh.f32 %v282_v32 }
 0x472   :  { %v347_v33 = vpop.eup %346 }
 0x473   :  { %320 = vmatmul.f32.vlgmr.msra.gmra.mxu2 %v347_v33 }
 0x4f6   :  { %v321_v36 = vpop.f32.mrf.mxu2 }
 0x4f7   :  { %v322_v37 = vadd.f32 %v331_v34, %v321_v36 }
 0x4f9   :  { %324 = vst [vmem:[%s737_s6] sm:$0xff] %v322_v37 }

</bundles_post_ra>
